<compile_context>
chip_gen: v7x
topology: tpu7x:2x2x1
jax: 0.10.0
libtpu: 0.0.40
codegen_flags: <defaults>
</compile_context>

<pallas_src>
import functools

import jax
import jax.numpy as jnp
from jax import lax
from jax.experimental import pallas as pl
from jax.experimental.pallas import tpu as pltpu

EPS = 1e-5


def resblock_kernel(x_ref, w1_ref, w2_ref, p_ref, o_ref, *, H, C, inv_count):
    """Fused ResBlock forward on a lane-dense (B*H, W*C) activation view.

    x_ref : (BH, WC)      input view (NHWC collapsed: rows = B*H, lanes = W*C)
    w1_ref: (3, WC, WC)   conv3x3 packed as banded matrices for dh = -1, 0, +1
                          (the W zero-padding is folded into the band structure)
    w2_ref: (WC, WC)      conv1x1 packed as a block-diagonal matrix
    p_ref : (1, 4*WC)     [gamma1 | beta1 | gamma2 | beta2], each tiled to lanes
    o_ref : (BH, WC)      output view
    """
    x = x_ref[...]
    BH, WC = x.shape

    p = p_ref[...]                                   # (1, 4*WC), single tiny DMA
    g1, bt1 = p[:, 0 * WC:1 * WC], p[:, 1 * WC:2 * WC]
    g2, bt2 = p[:, 2 * WC:3 * WC], p[:, 3 * WC:4 * WC]

    # Per-image border masks for the dh = ±1 taps (H zero-padding).
    row = lax.broadcasted_iota(jnp.int32, (BH, 1), 0)
    has_above = (row % H) != 0
    has_below = (row % H) != (H - 1)

    def channel_sum(vrow):
        # vrow: (1, WC) with lane index w*C + c.  Circular roll-tree with
        # shifts C, 2C, ... sums the W lanes of each channel (W power of 2);
        # result is already tiled in lane layout.  XLU work, no MXU / csum DMA.
        s = vrow
        shift = C
        while shift < WC:
            s = s + pltpu.roll(s, shift, axis=1)
            shift *= 2
        return s

    def bn_apply(v, g_l, bt_l):
        # Training-mode BN over (N,H,W) per channel, fused into one per-lane
        # scale & shift.  Rows reduced first (linear, exact reordering), then
        # the lane/channel sum.  Conv bias is dropped: it cancels exactly.
        rs = jnp.sum(v, axis=0, keepdims=True)            # (1, WC)
        rs2 = jnp.sum(v * v, axis=0, keepdims=True)       # (1, WC)
        mean = channel_sum(rs) * inv_count                # E[v]   per channel
        ex2 = channel_sum(rs2) * inv_count                # E[v^2] per channel
        var = jnp.maximum(ex2 - mean * mean, 0.0)         # guard tiny negatives
        scale = lax.rsqrt(var + EPS) * g_l                # (1, WC)
        shift = bt_l - mean * scale                       # (1, WC)
        return v * scale + shift                          # broadcast over rows

    # relu -> conv3x3: dh taps via sublane rolls (+ border mask), dw taps and
    # W padding folded into the banded weight matrices.
    r = jnp.maximum(x, 0.0)
    zero = jnp.zeros_like(r)
    up = jnp.where(has_above, pltpu.roll(r, 1, axis=0), zero)        # row h-1
    dn = jnp.where(has_below, pltpu.roll(r, BH - 1, axis=0), zero)   # row h+1 (roll by -1)
    y = (jnp.dot(up, w1_ref[0], preferred_element_type=jnp.float32)
         + jnp.dot(r, w1_ref[1], preferred_element_type=jnp.float32)
         + jnp.dot(dn, w1_ref[2], preferred_element_type=jnp.float32))
    y = bn_apply(y, g1, bt1)

    # relu -> conv1x1 (block-diagonal matmul) -> BN -> residual add.
    a = jnp.maximum(y, 0.0)
    z = jnp.dot(a, w2_ref[...], preferred_element_type=jnp.float32)
    z = bn_apply(z, g2, bt2)
    o_ref[...] = z + x


def _pack_params(params, B, H, W, C):
    """Host-side (one-time) repacking of the ResBlock weights for the kernel."""
    w1, b1, g1, bt1, w2, b2, g2, bt2 = [jnp.asarray(p, jnp.float32) for p in params]
    del b1, b2  # conv biases cancel exactly under training-mode BatchNorm
    WC = W * C

    # conv3x3: for each dh a (WC, WC) banded matrix whose (w_in*C+c, w_out*C+o)
    # entry is w1[dh+1, dw+1, c, o] for dw = w_in - w_out in {-1,0,1}; the W
    # zero-padding falls out of the band structure.
    def band(dh):
        m = jnp.zeros((WC, WC), jnp.float32)
        for dw in (-1, 0, 1):
            m = m + jnp.kron(jnp.eye(W, W, k=-dw, dtype=jnp.float32), w1[dh + 1, dw + 1])
        return m

    w1b = jnp.stack([band(-1), band(0), band(1)], axis=0)              # (3, WC, WC)
    w2bd = jnp.kron(jnp.eye(W, dtype=jnp.float32), w2)                 # (WC, WC)

    # BN affine params tiled to the (1, WC) lane layout and packed into ONE
    # lane-aligned array (slices at multiples of WC inside the kernel).
    pvec = jnp.concatenate(
        [jnp.tile(v.reshape(1, C), (1, W)) for v in (g1, bt1, g2, bt2)], axis=1)  # (1, 4*WC)
    return w1b, w2bd, pvec


def resblock_pallas(x_nchw, params):
    """NCHW in / NCHW out; the Pallas kernel runs on a lane-dense (B*H, W*C) view."""
    x = jnp.transpose(x_nchw, (0, 2, 3, 1)).astype(jnp.float32)        # NHWC
    B, H, W, C = x.shape
    WC = W * C
    assert W & (W - 1) == 0, "roll-tree channel sum needs power-of-two W"
    x2 = x.reshape(B * H, WC)                                          # lane-dense view (free reshape)

    w1b, w2bd, pvec = _pack_params(params, B, H, W, C)

    vmem = functools.partial(pl.BlockSpec, memory_space=pltpu.MemorySpace.VMEM)
    kernel = functools.partial(resblock_kernel, H=H, C=C,
                               inv_count=1.0 / float(B * H * W))
    out2 = pl.pallas_call(
        kernel,
        out_shape=jax.ShapeDtypeStruct((B * H, WC), jnp.float32),
        in_specs=[vmem(), vmem(), vmem(), vmem()],
        out_specs=vmem(),
    )(x2, w1b, w2bd, pvec)

    return jnp.transpose(out2.reshape(B, H, W, C), (0, 3, 1, 2))       # back to NCHW


def resblock_reference(x_nchw, params):
    """Pure-JAX reference of the PyTorch forward (training-mode BN)."""
    w1, b1, g1, bt1, w2, b2, g2, bt2 = params
    x = jnp.transpose(x_nchw, (0, 2, 3, 1)).astype(jnp.float32)        # NHWC

    def bn(v, gamma, beta):
        mean = jnp.mean(v, axis=(0, 1, 2), keepdims=True)
        var = jnp.mean((v - mean) ** 2, axis=(0, 1, 2), keepdims=True)
        return (v - mean) * lax.rsqrt(var + EPS) * gamma + beta

    r = jax.nn.relu(x)
    y = lax.conv_general_dilated(
        r, w1, window_strides=(1, 1), padding="SAME",
        dimension_numbers=("NHWC", "HWIO", "NHWC")) + b1
    y = bn(y, g1, bt1)
    y = jax.nn.relu(y)
    z = jnp.einsum("bhwc,cd->bhwd", y, w2) + b2
    z = bn(z, g2, bt2)
    out = z + x
    return jnp.transpose(out, (0, 3, 1, 2))


def make_params(key, dim):
    """Deterministic synthetic parameters (shapes follow ResBlock.__init__)."""
    ks = jax.random.split(key, 8)
    w1 = jax.random.normal(ks[0], (3, 3, dim, dim), jnp.float32) * 0.1     # conv3x3 (HWIO)
    b1 = jax.random.normal(ks[1], (dim,), jnp.float32) * 0.1
    g1 = 1.0 + 0.1 * jax.random.normal(ks[2], (dim,), jnp.float32)         # bn1 gamma
    bt1 = 0.1 * jax.random.normal(ks[3], (dim,), jnp.float32)              # bn1 beta
    w2 = jax.random.normal(ks[4], (dim, dim), jnp.float32) * 0.1           # conv1x1 (IO)
    b2 = jax.random.normal(ks[5], (dim,), jnp.float32) * 0.1
    g2 = 1.0 + 0.1 * jax.random.normal(ks[6], (dim,), jnp.float32)         # bn2 gamma
    bt2 = 0.1 * jax.random.normal(ks[7], (dim,), jnp.float32)              # bn2 beta
    return (w1, b1, g1, bt1, w2, b2, g2, bt2)


if __name__ == "__main__":
    B, C, H, W = 2, 8, 16, 16            # W*C = 128 -> exact lane packing
    key = jax.random.PRNGKey(0)
    kx, kp = jax.random.split(key)

    x = jax.random.normal(kx, (B, C, H, W), jnp.float32)   # NCHW like PyTorch
    params = make_params(kp, C)

    out = jax.block_until_ready(resblock_pallas(x, params))
    ref = jax.block_until_ready(resblock_reference(x, params))

    assert out.shape == (B, C, H, W)
    err = jnp.max(jnp.abs(out - ref))
    assert jnp.allclose(out, ref, atol=2e-4, rtol=2e-4), f"max abs err {err}"
    print("KERNEL_OK")
</pallas_src>

<mosaic_0001>
module attributes {stable_mosaic.version = 11 : i64} {
  func.func @resblock_kernel(%arg0: memref<32x128xf32, #tpu.memory_space<vmem>>, %arg1: memref<3x128x128xf32, #tpu.memory_space<vmem>>, %arg2: memref<128x128xf32, #tpu.memory_space<vmem>>, %arg3: memref<1x512xf32, #tpu.memory_space<vmem>>, %arg4: memref<32x128xf32, #tpu.memory_space<vmem>>) attributes {dimension_semantics = [], scalar_prefetch = 0 : i64, scratch_operands = 0 : i64, tpu.core_type = #tpu.core_type<tc>} {
    %c0 = arith.constant 0 : index
    %c0_0 = arith.constant 0 : index
    %0 = vector.load %arg0[%c0, %c0_0] : memref<32x128xf32, #tpu.memory_space<vmem>>, vector<32x128xf32>
    %c0_1 = arith.constant 0 : index
    %c0_2 = arith.constant 0 : index
    %1 = vector.load %arg3[%c0_1, %c0_2] : memref<1x512xf32, #tpu.memory_space<vmem>>, vector<1x512xf32>
    %2 = vector.extract_strided_slice %1 {offsets = [0, 0], sizes = [1, 128], strides = [1, 1]} : vector<1x512xf32> to vector<1x128xf32>
    %3 = vector.extract_strided_slice %1 {offsets = [0, 128], sizes = [1, 128], strides = [1, 1]} : vector<1x512xf32> to vector<1x128xf32>
    %4 = vector.extract_strided_slice %1 {offsets = [0, 256], sizes = [1, 128], strides = [1, 1]} : vector<1x512xf32> to vector<1x128xf32>
    %5 = vector.extract_strided_slice %1 {offsets = [0, 384], sizes = [1, 128], strides = [1, 1]} : vector<1x512xf32> to vector<1x128xf32>
    %6 = tpu.iota {dimensions = array<i32: 0>} : vector<32x1xi32>
    %c16_i32 = arith.constant 16 : i32
    %c0_i32 = arith.constant 0 : i32
    %7 = arith.cmpi eq, %c16_i32, %c0_i32 : i32
    %c1_i32 = arith.constant 1 : i32
    %8 = arith.select %7, %c1_i32, %c16_i32 : i32
    %9 = vector.broadcast %8 : i32 to vector<32x1xi32>
    %10 = arith.remsi %6, %9 : vector<32x1xi32>
    %c0_i32_3 = arith.constant 0 : i32
    %11 = vector.broadcast %c0_i32_3 : i32 to vector<32x1xi32>
    %12 = arith.cmpi ne, %10, %11 : vector<32x1xi32>
    %c0_i32_4 = arith.constant 0 : i32
    %13 = vector.broadcast %c0_i32_4 : i32 to vector<32x1xi32>
    %14 = arith.cmpi slt, %10, %13 : vector<32x1xi32>
    %c0_i32_5 = arith.constant 0 : i32
    %15 = arith.cmpi slt, %8, %c0_i32_5 : i32
    %16 = vector.broadcast %15 : i1 to vector<32x1xi1>
    %17 = vector.broadcast %16 : vector<32x1xi1> to vector<32x1xi1>
    %18 = arith.xori %14, %17 : vector<32x1xi1>
    %19 = arith.andi %18, %12 : vector<32x1xi1>
    %20 = vector.broadcast %8 : i32 to vector<32x1xi32>
    %21 = arith.addi %10, %20 : vector<32x1xi32>
    %22 = arith.select %19, %21, %10 : vector<32x1xi1>, vector<32x1xi32>
    %c0_i32_6 = arith.constant 0 : i32
    %23 = vector.broadcast %c0_i32_6 : i32 to vector<32x1xi32>
    %24 = arith.cmpi ne, %22, %23 : vector<32x1xi32>
    %c16_i32_7 = arith.constant 16 : i32
    %c0_i32_8 = arith.constant 0 : i32
    %25 = arith.cmpi eq, %c16_i32_7, %c0_i32_8 : i32
    %c1_i32_9 = arith.constant 1 : i32
    %26 = arith.select %25, %c1_i32_9, %c16_i32_7 : i32
    %27 = vector.broadcast %26 : i32 to vector<32x1xi32>
    %28 = arith.remsi %6, %27 : vector<32x1xi32>
    %c0_i32_10 = arith.constant 0 : i32
    %29 = vector.broadcast %c0_i32_10 : i32 to vector<32x1xi32>
    %30 = arith.cmpi ne, %28, %29 : vector<32x1xi32>
    %c0_i32_11 = arith.constant 0 : i32
    %31 = vector.broadcast %c0_i32_11 : i32 to vector<32x1xi32>
    %32 = arith.cmpi slt, %28, %31 : vector<32x1xi32>
    %c0_i32_12 = arith.constant 0 : i32
    %33 = arith.cmpi slt, %26, %c0_i32_12 : i32
    %34 = vector.broadcast %33 : i1 to vector<32x1xi1>
    %35 = vector.broadcast %34 : vector<32x1xi1> to vector<32x1xi1>
    %36 = arith.xori %32, %35 : vector<32x1xi1>
    %37 = arith.andi %36, %30 : vector<32x1xi1>
    %38 = vector.broadcast %26 : i32 to vector<32x1xi32>
    %39 = arith.addi %28, %38 : vector<32x1xi32>
    %40 = arith.select %37, %39, %28 : vector<32x1xi1>, vector<32x1xi32>
    %c15_i32 = arith.constant 15 : i32
    %41 = vector.broadcast %c15_i32 : i32 to vector<32x1xi32>
    %42 = arith.cmpi ne, %40, %41 : vector<32x1xi32>
    %cst = arith.constant 0.000000e+00 : f32
    %43 = vector.broadcast %cst : f32 to vector<32x128xf32>
    %44 = arith.maximumf %0, %43 : vector<32x128xf32>
    %cst_13 = arith.constant 0.000000e+00 : f32
    %45 = vector.broadcast %cst_13 : f32 to vector<32x128xf32>
    %c1_i32_14 = arith.constant 1 : i32
    %46 = tpu.dynamic_rotate %44 by %c1_i32_14 dim 0 : vector<32x128xf32>, i32 -> vector<32x128xf32>
    %47 = vector.shape_cast %24 : vector<32x1xi1> to vector<32x1xi1>
    %48 = vector.broadcast %47 : vector<32x1xi1> to vector<32x128xi1>
    %49 = arith.select %48, %46, %45 : vector<32x128xi1>, vector<32x128xf32>
    %c31_i32 = arith.constant 31 : i32
    %50 = tpu.dynamic_rotate %44 by %c31_i32 dim 0 : vector<32x128xf32>, i32 -> vector<32x128xf32>
    %51 = vector.shape_cast %42 : vector<32x1xi1> to vector<32x1xi1>
    %52 = vector.broadcast %51 : vector<32x1xi1> to vector<32x128xi1>
    %53 = arith.select %52, %50, %45 : vector<32x128xi1>, vector<32x128xf32>
    %c0_15 = arith.constant 0 : index
    %c0_16 = arith.constant 0 : index
    %c0_17 = arith.constant 0 : index
    %54 = vector.load %arg1[%c0_15, %c0_16, %c0_17] : memref<3x128x128xf32, #tpu.memory_space<vmem>>, vector<1x128x128xf32>
    %55 = vector.shape_cast %54 : vector<1x128x128xf32> to vector<128x128xf32>
    %cst_18 = arith.constant dense<0.000000e+00> : vector<32x128xf32>
    %56 = tpu.matmul %49, %55, %cst_18 {dimension_numbers = #tpu.dot_dimension_numbers<[1], [0], [0], [1], [0, 0, 1, 1], [], []>} : vector<32x128xf32>, vector<128x128xf32>, vector<32x128xf32> -> vector<32x128xf32>
    %c1 = arith.constant 1 : index
    %c0_19 = arith.constant 0 : index
    %c0_20 = arith.constant 0 : index
    %57 = vector.load %arg1[%c1, %c0_19, %c0_20] : memref<3x128x128xf32, #tpu.memory_space<vmem>>, vector<1x128x128xf32>
    %58 = vector.shape_cast %57 : vector<1x128x128xf32> to vector<128x128xf32>
    %cst_21 = arith.constant dense<0.000000e+00> : vector<32x128xf32>
    %59 = tpu.matmul %44, %58, %cst_21 {dimension_numbers = #tpu.dot_dimension_numbers<[1], [0], [0], [1], [0, 0, 1, 1], [], []>} : vector<32x128xf32>, vector<128x128xf32>, vector<32x128xf32> -> vector<32x128xf32>
    %60 = arith.addf %56, %59 : vector<32x128xf32>
    %c2 = arith.constant 2 : index
    %c0_22 = arith.constant 0 : index
    %c0_23 = arith.constant 0 : index
    %61 = vector.load %arg1[%c2, %c0_22, %c0_23] : memref<3x128x128xf32, #tpu.memory_space<vmem>>, vector<1x128x128xf32>
    %62 = vector.shape_cast %61 : vector<1x128x128xf32> to vector<128x128xf32>
    %cst_24 = arith.constant dense<0.000000e+00> : vector<32x128xf32>
    %63 = tpu.matmul %53, %62, %cst_24 {dimension_numbers = #tpu.dot_dimension_numbers<[1], [0], [0], [1], [0, 0, 1, 1], [], []>} : vector<32x128xf32>, vector<128x128xf32>, vector<32x128xf32> -> vector<32x128xf32>
    %64 = arith.addf %60, %63 : vector<32x128xf32>
    %cst_25 = arith.constant dense<0.000000e+00> : vector<128xf32>
    %65 = vector.multi_reduction <add>, %64, %cst_25 [0] : vector<32x128xf32> to vector<128xf32>
    %66 = vector.shape_cast %65 : vector<128xf32> to vector<1x128xf32>
    %67 = arith.mulf %64, %64 : vector<32x128xf32>
    %cst_26 = arith.constant dense<0.000000e+00> : vector<128xf32>
    %68 = vector.multi_reduction <add>, %67, %cst_26 [0] : vector<32x128xf32> to vector<128xf32>
    %69 = vector.shape_cast %68 : vector<128xf32> to vector<1x128xf32>
    %c8_i32 = arith.constant 8 : i32
    %70 = tpu.dynamic_rotate %66 by %c8_i32 dim 1 : vector<1x128xf32>, i32 -> vector<1x128xf32>
    %71 = arith.addf %66, %70 : vector<1x128xf32>
    %c16_i32_27 = arith.constant 16 : i32
    %72 = tpu.dynamic_rotate %71 by %c16_i32_27 dim 1 : vector<1x128xf32>, i32 -> vector<1x128xf32>
    %73 = arith.addf %71, %72 : vector<1x128xf32>
    %c32_i32 = arith.constant 32 : i32
    %74 = tpu.dynamic_rotate %73 by %c32_i32 dim 1 : vector<1x128xf32>, i32 -> vector<1x128xf32>
    %75 = arith.addf %73, %74 : vector<1x128xf32>
    %c64_i32 = arith.constant 64 : i32
    %76 = tpu.dynamic_rotate %75 by %c64_i32 dim 1 : vector<1x128xf32>, i32 -> vector<1x128xf32>
    %77 = arith.addf %75, %76 : vector<1x128xf32>
    %cst_28 = arith.constant 0.001953125 : f32
    %78 = vector.broadcast %cst_28 : f32 to vector<1x128xf32>
    %79 = arith.mulf %77, %78 : vector<1x128xf32>
    %c8_i32_29 = arith.constant 8 : i32
    %80 = tpu.dynamic_rotate %69 by %c8_i32_29 dim 1 : vector<1x128xf32>, i32 -> vector<1x128xf32>
    %81 = arith.addf %69, %80 : vector<1x128xf32>
    %c16_i32_30 = arith.constant 16 : i32
    %82 = tpu.dynamic_rotate %81 by %c16_i32_30 dim 1 : vector<1x128xf32>, i32 -> vector<1x128xf32>
    %83 = arith.addf %81, %82 : vector<1x128xf32>
    %c32_i32_31 = arith.constant 32 : i32
    %84 = tpu.dynamic_rotate %83 by %c32_i32_31 dim 1 : vector<1x128xf32>, i32 -> vector<1x128xf32>
    %85 = arith.addf %83, %84 : vector<1x128xf32>
    %c64_i32_32 = arith.constant 64 : i32
    %86 = tpu.dynamic_rotate %85 by %c64_i32_32 dim 1 : vector<1x128xf32>, i32 -> vector<1x128xf32>
    %87 = arith.addf %85, %86 : vector<1x128xf32>
    %cst_33 = arith.constant 0.001953125 : f32
    %88 = vector.broadcast %cst_33 : f32 to vector<1x128xf32>
    %89 = arith.mulf %87, %88 : vector<1x128xf32>
    %90 = arith.mulf %79, %79 : vector<1x128xf32>
    %91 = arith.subf %89, %90 : vector<1x128xf32>
    %cst_34 = arith.constant 0.000000e+00 : f32
    %92 = vector.broadcast %cst_34 : f32 to vector<1x128xf32>
    %93 = arith.maximumf %91, %92 : vector<1x128xf32>
    %cst_35 = arith.constant 9.99999974E-6 : f32
    %94 = vector.broadcast %cst_35 : f32 to vector<1x128xf32>
    %95 = arith.addf %93, %94 : vector<1x128xf32>
    %96 = math.rsqrt %95 : vector<1x128xf32>
    %97 = arith.mulf %96, %2 : vector<1x128xf32>
    %98 = arith.mulf %79, %97 : vector<1x128xf32>
    %99 = arith.subf %3, %98 : vector<1x128xf32>
    %100 = vector.broadcast %97 : vector<1x128xf32> to vector<32x128xf32>
    %101 = arith.mulf %64, %100 : vector<32x128xf32>
    %102 = vector.broadcast %99 : vector<1x128xf32> to vector<32x128xf32>
    %103 = arith.addf %101, %102 : vector<32x128xf32>
    %cst_36 = arith.constant 0.000000e+00 : f32
    %104 = vector.broadcast %cst_36 : f32 to vector<32x128xf32>
    %105 = arith.maximumf %103, %104 : vector<32x128xf32>
    %c0_37 = arith.constant 0 : index
    %c0_38 = arith.constant 0 : index
    %106 = vector.load %arg2[%c0_37, %c0_38] : memref<128x128xf32, #tpu.memory_space<vmem>>, vector<128x128xf32>
    %cst_39 = arith.constant dense<0.000000e+00> : vector<32x128xf32>
    %107 = tpu.matmul %105, %106, %cst_39 {dimension_numbers = #tpu.dot_dimension_numbers<[1], [0], [0], [1], [0, 0, 1, 1], [], []>} : vector<32x128xf32>, vector<128x128xf32>, vector<32x128xf32> -> vector<32x128xf32>
    %cst_40 = arith.constant dense<0.000000e+00> : vector<128xf32>
    %108 = vector.multi_reduction <add>, %107, %cst_40 [0] : vector<32x128xf32> to vector<128xf32>
    %109 = vector.shape_cast %108 : vector<128xf32> to vector<1x128xf32>
    %110 = arith.mulf %107, %107 : vector<32x128xf32>
    %cst_41 = arith.constant dense<0.000000e+00> : vector<128xf32>
    %111 = vector.multi_reduction <add>, %110, %cst_41 [0] : vector<32x128xf32> to vector<128xf32>
    %112 = vector.shape_cast %111 : vector<128xf32> to vector<1x128xf32>
    %c8_i32_42 = arith.constant 8 : i32
    %113 = tpu.dynamic_rotate %109 by %c8_i32_42 dim 1 : vector<1x128xf32>, i32 -> vector<1x128xf32>
    %114 = arith.addf %109, %113 : vector<1x128xf32>
    %c16_i32_43 = arith.constant 16 : i32
    %115 = tpu.dynamic_rotate %114 by %c16_i32_43 dim 1 : vector<1x128xf32>, i32 -> vector<1x128xf32>
    %116 = arith.addf %114, %115 : vector<1x128xf32>
    %c32_i32_44 = arith.constant 32 : i32
    %117 = tpu.dynamic_rotate %116 by %c32_i32_44 dim 1 : vector<1x128xf32>, i32 -> vector<1x128xf32>
    %118 = arith.addf %116, %117 : vector<1x128xf32>
    %c64_i32_45 = arith.constant 64 : i32
    %119 = tpu.dynamic_rotate %118 by %c64_i32_45 dim 1 : vector<1x128xf32>, i32 -> vector<1x128xf32>
    %120 = arith.addf %118, %119 : vector<1x128xf32>
    %cst_46 = arith.constant 0.001953125 : f32
    %121 = vector.broadcast %cst_46 : f32 to vector<1x128xf32>
    %122 = arith.mulf %120, %121 : vector<1x128xf32>
    %c8_i32_47 = arith.constant 8 : i32
    %123 = tpu.dynamic_rotate %112 by %c8_i32_47 dim 1 : vector<1x128xf32>, i32 -> vector<1x128xf32>
    %124 = arith.addf %112, %123 : vector<1x128xf32>
    %c16_i32_48 = arith.constant 16 : i32
    %125 = tpu.dynamic_rotate %124 by %c16_i32_48 dim 1 : vector<1x128xf32>, i32 -> vector<1x128xf32>
    %126 = arith.addf %124, %125 : vector<1x128xf32>
    %c32_i32_49 = arith.constant 32 : i32
    %127 = tpu.dynamic_rotate %126 by %c32_i32_49 dim 1 : vector<1x128xf32>, i32 -> vector<1x128xf32>
    %128 = arith.addf %126, %127 : vector<1x128xf32>
    %c64_i32_50 = arith.constant 64 : i32
    %129 = tpu.dynamic_rotate %128 by %c64_i32_50 dim 1 : vector<1x128xf32>, i32 -> vector<1x128xf32>
    %130 = arith.addf %128, %129 : vector<1x128xf32>
    %cst_51 = arith.constant 0.001953125 : f32
    %131 = vector.broadcast %cst_51 : f32 to vector<1x128xf32>
    %132 = arith.mulf %130, %131 : vector<1x128xf32>
    %133 = arith.mulf %122, %122 : vector<1x128xf32>
    %134 = arith.subf %132, %133 : vector<1x128xf32>
    %cst_52 = arith.constant 0.000000e+00 : f32
    %135 = vector.broadcast %cst_52 : f32 to vector<1x128xf32>
    %136 = arith.maximumf %134, %135 : vector<1x128xf32>
    %cst_53 = arith.constant 9.99999974E-6 : f32
    %137 = vector.broadcast %cst_53 : f32 to vector<1x128xf32>
    %138 = arith.addf %136, %137 : vector<1x128xf32>
    %139 = math.rsqrt %138 : vector<1x128xf32>
    %140 = arith.mulf %139, %4 : vector<1x128xf32>
    %141 = arith.mulf %122, %140 : vector<1x128xf32>
    %142 = arith.subf %5, %141 : vector<1x128xf32>
    %143 = vector.broadcast %140 : vector<1x128xf32> to vector<32x128xf32>
    %144 = arith.mulf %107, %143 : vector<32x128xf32>
    %145 = vector.broadcast %142 : vector<1x128xf32> to vector<32x128xf32>
    %146 = arith.addf %144, %145 : vector<32x128xf32>
    %147 = arith.addf %146, %0 : vector<32x128xf32>
    %c0_54 = arith.constant 0 : index
    %c0_55 = arith.constant 0 : index
    %148 = vector.load %arg4[%c0_54, %c0_55] : memref<32x128xf32, #tpu.memory_space<vmem>>, vector<32x128xf32>
    tpu.vector_store %arg4[%c0_54, %c0_55], %147 {strides = array<i32>} : memref<32x128xf32, #tpu.memory_space<vmem>>, vector<32x128xf32>,
    return
  }
}

</mosaic_0001>

<bundles_post_ra>
// kernel: tpu_custom_call.1
= control target key start
LH: loop header
LB: loop body
LE: loop exit
PB: predicated region body
PF: predicated region fallthrough
CT: control target
= control target key end

     0   :  { %9 = vsyncpa [#allocation3], 0  ;;  %s1492_s0 = inlined_call_operand.hbm [shape: f32[32,128], index: 0, kind: input, shape index: {}]   ;;  %s1493_s1 = inlined_call_operand.hbm [shape: f32[3,128,128], index: 1, kind: input, shape index: {}]   ;;  %s1494_s2 = inlined_call_operand.hbm [shape: f32[128,128], index: 2, kind: input, shape index: {}]   ;;  %s1495_s3 = inlined_call_operand.vmem [shape: f32[1,512], index: 3, kind: input, shape index: {}]   ;;  %s1496_s4 = inlined_call_operand.hbm [shape: f32[32,128], index: 4, kind: output, shape index: {}]  }
   0x1   :  { %10 = vsyncpa [#allocation6], 0 }
   0x2   :  { %11 = vsyncpa [#allocation4], 0  ;;  %s1248_s15 = smov [#allocation5]   ;;  %s1249_s17 = smov [#allocation2]  }
   0x3   :  { %s29_s16 = sshll.u32 %s1248_s15, 4  ;;  %s17_s18 = sshll.u32 %s1249_s17, 4  ;;  %s30_s16 = int_to_ptr.vmem [resolvable:$true] %s29_s16  ;;  %s1282_s18 = int_to_ptr.vmem [resolvable:$true] %s17_s18 }
   0x4   :  { %s1154_s21 = scalar_lea.hbm %s1493_s1, 6144 }
   0x5   :  { %p1155_p0 = scmp.ne.s32.totalorder %s1493_s1, %s1154_s21  ;;  %p1158_p1 = scmp.lt.u32.totalorder %s1154_s21, %s1493_s1 }
   0x7   :  { %p1160_p2 = pnand %p1158_p1, %p1155_p0 }
   0x9   :  { %1163 = shalt.err (!%p1160_p2)
}
   0xa   :  { %s1164_s26 = scalar_lea.vmem %s30_s16, 6144  ;;  %p1169_p4 = scmp.lt.s32.totalorder %s30_s16, %s30_s16 }
   0xb   :  { %p1165_p3 = scmp.ne.s32.totalorder %s30_s16, %s1164_s26  ;;  %p1170_p5 = scmp.lt.s32.totalorder %s1164_s26, %s1164_s26 }
   0xd   :  { %p1171_p6 = por %p1170_p5, %p1169_p4 }
   0xf   :  { %p1172_p7 = pnand %p1171_p6, %p1165_p3 }
  0x11   :  { %1175 = shalt.err (!%p1172_p7)
}
  0x12   :  { %s1250_s27 = smov 128   ;;  %s1251_s28 = smov 8  }
  0x13   :  { %35 = dma.hbm_to_vmem [thread:$0]  %s1493_s1, 6144, %s30_s16, [#allocation6], %s1250_s27, %s1250_s27, %s1251_s28  }
  0x14   :  { %s1176_s7 = scalar_lea.hbm %s1492_s0, 512 }
  0x15   :  { %p1177_p8 = scmp.ne.s32.totalorder %s1492_s0, %s1176_s7  ;;  %p1180_p9 = scmp.lt.u32.totalorder %s1176_s7, %s1492_s0 }
  0x17   :  { %p1182_p10 = pnand %p1180_p9, %p1177_p8 }
  0x19   :  { %1185 = shalt.err (!%p1182_p10)
}
  0x1a   :  { %s1186_s12 = scalar_lea.vmem %s1282_s18, 512  ;;  %p1191_p12 = scmp.lt.s32.totalorder %s1282_s18, %s1282_s18 }
  0x1b   :  { %p1187_p11 = scmp.ne.s32.totalorder %s1282_s18, %s1186_s12  ;;  %p1192_p13 = scmp.lt.s32.totalorder %s1186_s12, %s1186_s12 }
  0x1d   :  { %p1193_p0 = por %p1192_p13, %p1191_p12 }
  0x1f   :  { %p1194_p1 = pnand %p1193_p0, %p1187_p11 }
  0x21   :  { %1197 = shalt.err (!%p1194_p1)
}
  0x22   :  { %23 = dma.hbm_to_vmem [thread:$0]  %s1492_s0, 512, %s1282_s18, [#allocation3], %s1250_s27, %s1250_s27, %s1251_s28  }
  0x23   :  { %s1252_s14 = smov [#allocation7]   ;;  %s1198_s19 = scalar_lea.hbm %s1494_s2, 2048 }
  0x24   :  { %s41_s15 = sshll.u32 %s1252_s14, 4  ;;  %p1199_p2 = scmp.ne.s32.totalorder %s1494_s2, %s1198_s19  ;;  %s42_s15 = int_to_ptr.vmem [resolvable:$true] %s41_s15 }
  0x25   :  { %p1202_p3 = scmp.lt.u32.totalorder %s1198_s19, %s1494_s2 }
  0x27   :  { %p1204_p4 = pnand %p1202_p3, %p1199_p2 }
  0x29   :  { %1207 = shalt.err (!%p1204_p4)
}
  0x2a   :  { %s1208_s24 = scalar_lea.vmem %s42_s15, 2048  ;;  %p1213_p6 = scmp.lt.s32.totalorder %s42_s15, %s42_s15 }
  0x2b   :  { %p1209_p5 = scmp.ne.s32.totalorder %s42_s15, %s1208_s24  ;;  %p1214_p7 = scmp.lt.s32.totalorder %s1208_s24, %s1208_s24 }
  0x2d   :  { %p1215_p8 = por %p1214_p7, %p1213_p6 }
  0x2f   :  { %p1216_p9 = pnand %p1215_p8, %p1209_p5 }
  0x31   :  { %1219 = shalt.err (!%p1216_p9)
}
  0x32   :  { %47 = dma.hbm_to_vmem [thread:$0]  %s1494_s2, 2048, %s42_s15, [#allocation6], %s1250_s27, %s1250_s27, %s1251_s28  }
  0x33   :  { %1242 = dma.done.wait [#allocation3], 512  }
  0x34   :  { %1243 = vsyncadd [#allocation3], 4294966784 }
  0x35   :  { %1244 = dma.done.wait [#allocation6], 8192  }
  0x36   :  { %1245 = vsyncadd [#allocation6], 4294959104  ;;  %v64_v0 = vlaneseq  ;;  %v171_v1 = vld [vmem:[#allocation5] sm:$0xff]  ;;  %v172_v2 = vld [vmem:[#allocation5 + $0x8] sm:$0xff]  ;;  %s1253_s2 = smov 16   ;;  %s1254_s25 = smov 32  }
  0x37   :  { %v173_v3 = vld [vmem:[#allocation5 + $0x10] sm:$0xff]  ;;  %v1037_v5 = vpack.c.bf16 %v172_v2, %v171_v1  ;;  %v174_v6 = vld [vmem:[#allocation5 + $0x18] sm:$0xff]  ;;  %v175_v8 = vld [vmem:[#allocation5 + $0x20] sm:$0xff]  ;;  %s1255_s26 = smov 64  }
  0x38   :  { %v1334_v4 = vshrl.u32 %v64_v0, 7  ;;  %v1041_v7 = vpack.c.bf16 %v174_v6, %v173_v3  ;;  %v176_v9 = vld [vmem:[#allocation5 + $0x28] sm:$0xff]  ;;  %v177_v12 = vld [vmem:[#allocation5 + $0x30] sm:$0xff]  ;;  %v188_v13 = vld [vmem:[#allocation5 + $0x80] sm:$0xff] }
  0x39   :  { %1038 = vmatprep.subr.bf16.mxu0 %v1037_v5  ;;  %v1045_v11 = vpack.c.bf16 %v176_v9, %v175_v8  ;;  %v189_v14 = vld [vmem:[#allocation5 + $0x88] sm:$0xff]  ;;  %v178_v15 = vld [vmem:[#allocation5 + $0x38] sm:$0xff]  ;;  %v1337_v17 = vld [vmem:[#allocation2] sm:$0xff] }
  0x3a   :  { %1040 = vmatpush3.bf16.msra.mxu0 %v1037_v5  ;;  %v73_v10 = vand.u32 15, %v1334_v4  ;;  %v1005_v16 = vpack.c.bf16 %v189_v14, %v188_v13  ;;  %v1339_v18 = vld [vmem:[#allocation2 + $0x18] sm:$0xff]  ;;  %v1342_v19 = vmax.f32 %v1337_v17, 0.0  ;;  %v190_v21 = vld [vmem:[#allocation5 + $0x90] sm:$0xff]  ;;  %vm133_vm1 = vcmp.lt.s32.totalorder %v1334_v4, 1  ;;  %v192_v28 = vld [vmem:[#allocation5 + $0xa0] sm:$0xff] }
  0x3b   :  { %1042 = vmatprep.subr.bf16.mxu0 %v1041_v7  ;;  %v1345_v20 = vmax.f32 %v1339_v18, 0.0  ;;  %v191_v23 = vld [vmem:[#allocation5 + $0x98] sm:$0xff]  ;;  %v1049_v24 = vpack.c.bf16 %v178_v15, %v177_v12  ;;  %v193_v29 = vld [vmem:[#allocation5 + $0xa8] sm:$0xff]  ;;  %v179_v30 = vld [vmem:[#allocation5 + $0x40] sm:$0xff]  ;;  %v67_v58 = vadd.s32 16, %v1334_v4  ;;  %vm154_vm3 = vcmp.lt.s32.totalorder %v1334_v4, 7 }
  0x3c   :  { %1006 = vmatprep.subr.bf16.mxu1 %v1005_v16  ;;  %vm1347_vm0 = vcmp.ne.s32.totalorder %v73_v10, 0  ;;  %v129_v25 = vrot.slane %v1342_v19, 7  ;;  %v1009_v27 = vpack.c.bf16 %v191_v23, %v190_v21  ;;  %v180_v31 = vld [vmem:[#allocation5 + $0x48] sm:$0xff]  ;;  %v1013_v32 = vpack.c.bf16 %v193_v29, %v192_v28  ;;  %885 = vmatprep.mubr.f32.mxu1 %v1342_v19  ;;  %v194_v34 = vld [vmem:[#allocation5 + $0xb0] sm:$0xff]  ;;  %v195_v35 = vld [vmem:[#allocation5 + $0xb8] sm:$0xff] }
  0x3d   :  { %1008 = vmatpush3.bf16.msra.mxu1 %v1005_v16  ;;  %v132_v26 = vrot.slane %v1345_v20, 7  ;;  %v1053_v36 = vpack.c.bf16 %v180_v31, %v179_v30  ;;  %v181_v37 = vld [vmem:[#allocation5 + $0x50] sm:$0xff]  ;;  %v182_v38 = vld [vmem:[#allocation5 + $0x58] sm:$0xff]  ;;  %v1017_v39 = vpack.c.bf16 %v195_v35, %v194_v34  ;;  %v196_v40 = vld [vmem:[#allocation5 + $0xc0] sm:$0xff]  ;;  %v87_v3 = vand.u32 15, %v67_v58 }
  0x3e   :  { %1044 = vmatpush3.bf16.msra.mxu0 %v1041_v7  ;;  %1010 = vmatprep.subr.bf16.mxu1 %v1009_v27  ;;  %v197_v41 = vld [vmem:[#allocation5 + $0xc8] sm:$0xff]  ;;  %v1057_v42 = vpack.c.bf16 %v182_v38, %v181_v37  ;;  %v183_v43 = vld [vmem:[#allocation5 + $0x60] sm:$0xff]  ;;  %v198_v46 = vld [vmem:[#allocation5 + $0xd0] sm:$0xff]  ;;  %v150_v14 = vrot.slane %v1342_v19, 1 }
  0x3f   :  { %1046 = vmatprep.subr.bf16.mxu0 %v1045_v11  ;;  %v137_v33 = vsel %vm133_vm1, %v132_v26, %v129_v25  ;;  %v184_v44 = vld [vmem:[#allocation5 + $0x68] sm:$0xff]  ;;  %v1021_v45 = vpack.c.bf16 %v197_v41, %v196_v40  ;;  %v199_v47 = vld [vmem:[#allocation5 + $0xd8] sm:$0xff]  ;;  %v185_v50 = vld [vmem:[#allocation5 + $0x70] sm:$0xff]  ;;  %vm119_vm2 = vcmp.ne.s32.totalorder %v87_v3, 0  ;;  %v68_v40 = vadd.s32 24, %v1334_v4 }
  0x40   :  { %923 = vmatprep.mubr.msk.f32.mxu0 %vm1347_vm0, %v137_v33  ;;  %v1061_v48 = vpack.c.bf16 %v184_v44, %v183_v43  ;;  %v1363_v49 = vld [vmem:[#allocation2 + $0x8] sm:$0xff]  ;;  %v186_v51 = vld [vmem:[#allocation5 + $0x78] sm:$0xff]  ;;  %v1025_v52 = vpack.c.bf16 %v199_v47, %v198_v46  ;;  %v1365_v53 = vld [vmem:[#allocation2 + $0x10] sm:$0xff]  ;;  %v153_v41 = vrot.slane %v1345_v20, 1 }
  0x41   :  { %1012 = vmatpush3.bf16.msra.mxu1 %v1009_v27  ;;  %v200_v54 = vld [vmem:[#allocation5 + $0xe0] sm:$0xff]  ;;  %v201_v55 = vld [vmem:[#allocation5 + $0xe8] sm:$0xff]  ;;  %v1368_v56 = vmax.f32 %v1363_v49, 0.0  ;;  %v1065_v57 = vpack.c.bf16 %v186_v51, %v185_v50  ;;  %v1372_v59 = vmax.f32 %v1365_v53, 0.0  ;;  %v202_v63 = vld [vmem:[#allocation5 + $0xf0] sm:$0xff]  ;;  %v94_v43 = vand.u32 15, %v68_v40 }
  0x42   :  { %1048 = vmatpush3.bf16.msra.mxu0 %v1045_v11  ;;  %1014 = vmatprep.subr.bf16.mxu1 %v1013_v32  ;;  %v375_v60 = vld [vmem:[#allocation5 + $0x100] sm:$0xff]  ;;  %v376_v61 = vld [vmem:[#allocation5 + $0x108] sm:$0xff]  ;;  %v1029_v62 = vpack.c.bf16 %v201_v55, %v200_v54  ;;  %v203_v0 = vld [vmem:[#allocation5 + $0xf8] sm:$0xff] }
  0x43   :  { %1050 = vmatprep.subr.bf16.mxu0 %v1049_v24  ;;  %v130_v1 = vrot.slane %v1368_v56, 7  ;;  %v1069_v2 = vpack.c.bf16 %v376_v61, %v375_v60  ;;  %v131_v5 = vrot.slane %v1372_v59, 7  ;;  %v377_v6 = vld [vmem:[#allocation5 + $0x110] sm:$0xff]  ;;  %v378_v7 = vld [vmem:[#allocation5 + $0x118] sm:$0xff]  ;;  %v1033_v8 = vpack.c.bf16 %v203_v0, %v202_v63  ;;  %v379_v12 = vld [vmem:[#allocation5 + $0x120] sm:$0xff] }
  0x44   :  { %v1073_v10 = vpack.c.bf16 %v378_v7, %v377_v6  ;;  %v380_v13 = vld [vmem:[#allocation5 + $0x128] sm:$0xff]  ;;  %v151_v15 = vrot.slane %v1368_v56, 1  ;;  %v381_v22 = vld [vmem:[#allocation5 + $0x130] sm:$0xff]  ;;  %v382_v23 = vld [vmem:[#allocation5 + $0x138] sm:$0xff]  ;;  %vm124_vm5 = vcmp.ne.s32.totalorder %v94_v43, 15 }
  0x45   :  { %1016 = vmatpush3.bf16.msra.mxu1 %v1013_v32  ;;  %v136_v9 = vsel %vm133_vm1, %v129_v25, %v130_v1  ;;  %v135_v11 = vsel %vm133_vm1, %v130_v1, %v131_v5  ;;  %v134_v16 = vsel %vm133_vm1, %v131_v5, %v132_v26  ;;  %v1077_v21 = vpack.c.bf16 %v380_v13, %v379_v12  ;;  %v383_v25 = vld [vmem:[#allocation5 + $0x140] sm:$0xff]  ;;  %v384_v27 = vld [vmem:[#allocation5 + $0x148] sm:$0xff]  ;;  %v385_v28 = vld [vmem:[#allocation5 + $0x150] sm:$0xff] }
  0x46   :  { %1052 = vmatpush3.bf16.msra.mxu0 %v1049_v24  ;;  %1018 = vmatprep.subr.bf16.mxu1 %v1017_v39  ;;  %v157_v19 = vsel %vm154_vm3, %v150_v14, %v151_v15  ;;  %v1081_v24 = vpack.c.bf16 %v382_v23, %v381_v22  ;;  %v1085_v26 = vpack.c.bf16 %v384_v27, %v383_v25  ;;  %v386_v29 = vld [vmem:[#allocation5 + $0x158] sm:$0xff]  ;;  %v387_v31 = vld [vmem:[#allocation5 + $0x160] sm:$0xff]  ;;  %v388_v32 = vld [vmem:[#allocation5 + $0x168] sm:$0xff] }
  0x47   :  { %1054 = vmatprep.subr.bf16.mxu0 %v1053_v36  ;;  %v1089_v30 = vpack.c.bf16 %v386_v29, %v385_v28  ;;  %v1093_v33 = vpack.c.bf16 %v388_v32, %v387_v31  ;;  %v389_v34 = vld [vmem:[#allocation5 + $0x170] sm:$0xff]  ;;  %v390_v35 = vld [vmem:[#allocation5 + $0x178] sm:$0xff]  ;;  %v561_v29 = vld [vmem:[#allocation7] sm:$0xff] }
  0x48   :  { %v1097_v37 = vpack.c.bf16 %v390_v35, %v389_v34  ;;  %v563_v32 = vld [vmem:[#allocation7 + $0x10] sm:$0xff]  ;;  %v568_v43 = vld [vmem:[#allocation7 + $0x38] sm:$0xff] }
  0x49   :  { %1020 = vmatpush3.bf16.msra.mxu1 %v1017_v39  ;;  %v152_v39 = vrot.slane %v1372_v59, 1 }
  0x4a   :  { %1056 = vmatpush3.bf16.msra.mxu0 %v1053_v36  ;;  %1022 = vmatprep.subr.bf16.mxu1 %v1021_v45  ;;  %v66_v36 = vadd.s32 8, %v1334_v4 }
  0x4b   :  { %1058 = vmatprep.subr.bf16.mxu0 %v1057_v42  ;;  %v155_v44 = vsel %vm154_vm3, %v152_v39, %v153_v41 }
  0x4c   :  { %v80_v38 = vand.u32 15, %v66_v36 }
  0x4d   :  { %1024 = vmatpush3.bf16.msra.mxu1 %v1021_v45  ;;  %v158_v45 = vsel %vm154_vm3, %v153_v41, %v150_v14 }
  0x4e   :  { %1060 = vmatpush3.bf16.msra.mxu0 %v1057_v42  ;;  %1026 = vmatprep.subr.bf16.mxu1 %v1025_v52  ;;  %vm122_vm4 = vcmp.ne.s32.totalorder %v80_v38, 15  ;;  %v156_v42 = vsel %vm154_vm3, %v151_v15, %v152_v39  ;;  %v566_v38 = vld [vmem:[#allocation7 + $0x28] sm:$0xff] }
  0x4f   :  { %1062 = vmatprep.subr.bf16.mxu0 %v1061_v48 }
  0x51   :  { %1028 = vmatpush3.bf16.msra.mxu1 %v1025_v52 }
  0x52   :  { %1064 = vmatpush3.bf16.msra.mxu0 %v1061_v48  ;;  %1030 = vmatprep.subr.bf16.mxu1 %v1029_v62 }
  0x53   :  { %1066 = vmatprep.subr.bf16.mxu0 %v1065_v57 }
  0x55   :  { %1032 = vmatpush3.bf16.msra.mxu1 %v1029_v62 }
  0x56   :  { %1068 = vmatpush3.bf16.msra.mxu0 %v1065_v57  ;;  %1034 = vmatprep.subr.bf16.mxu1 %v1033_v8 }
  0x57   :  { %1070 = vmatprep.subr.bf16.mxu0 %v1069_v2 }
  0x59   :  { %924 = vmatmul.mubr.f32.vlgmr.msra.gmra.mrb[0].mxu0 %v136_v9  ;;  %1036 = vmatpush3.bf16.msra.mxu1 %v1033_v8 }
  0x5a   :  { %1072 = vmatpush3.bf16.msra.mxu0 %v1069_v2  ;;  %926 = vmatprep.mubr.msk.f32.mxu0 %vm119_vm2, %v135_v11 }
  0x5b   :  { %1074 = vmatprep.subr.bf16.mxu0 %v1073_v10 }
  0x5c   :  { %886 = vmatmul.mubr.f32.vlgmr.msra.gmra.mrb[0].mxu1 %v1368_v56 }
  0x5d   :  { %927 = vmatmul.mubr.f32.gmra.mrb[2].mxu0 %v134_v16  ;;  %888 = vmatprep.mubr.f32.mxu1 %v1372_v59 }
  0x5e   :  { %1076 = vmatpush3.bf16.msra.mxu0 %v1073_v10  ;;  %961 = vmatprep.mubr.f32.mxu0 %v157_v19 }
  0x5f   :  { %1078 = vmatprep.subr.bf16.mxu0 %v1077_v21 }
  0x60   :  { %889 = vmatmul.mubr.f32.gmra.mrb[2].mxu1 %v1345_v20 }
  0x62   :  { %1080 = vmatpush3.bf16.msra.mxu0 %v1077_v21 }
  0x63   :  { %1082 = vmatprep.subr.bf16.mxu0 %v1081_v24 }
  0x66   :  { %1084 = vmatpush3.bf16.msra.mxu0 %v1081_v24 }
  0x67   :  { %1086 = vmatprep.subr.bf16.mxu0 %v1085_v26 }
  0x6a   :  { %1088 = vmatpush3.bf16.msra.mxu0 %v1085_v26 }
  0x6b   :  { %1090 = vmatprep.subr.bf16.mxu0 %v1089_v30 }
  0x6e   :  { %1092 = vmatpush3.bf16.msra.mxu0 %v1089_v30  ;;  %v562_v30 = vld [vmem:[#allocation7 + $0x8] sm:$0xff] }
  0x6f   :  { %1094 = vmatprep.subr.bf16.mxu0 %v1093_v33  ;;  %v1101_v31 = vpack.c.bf16 %v562_v30, %v561_v29 }
  0x71   :  { %1102 = vmatprep.subr.bf16.mxu1 %v1101_v31 }
  0x72   :  { %1096 = vmatpush3.bf16.msra.mxu0 %v1093_v33  ;;  %1104 = vmatpush3.bf16.msra.mxu1 %v1101_v31  ;;  %v564_v33 = vld [vmem:[#allocation7 + $0x18] sm:$0xff] }
  0x73   :  { %1098 = vmatprep.subr.bf16.mxu0 %v1097_v37  ;;  %v1105_v34 = vpack.c.bf16 %v564_v33, %v563_v32 }
  0x75   :  { %1106 = vmatprep.subr.bf16.mxu1 %v1105_v34 }
  0x76   :  { %1100 = vmatpush3.bf16.msra.mxu0 %v1097_v37  ;;  %1108 = vmatpush3.bf16.msra.mxu1 %v1105_v34  ;;  %v565_v37 = vld [vmem:[#allocation7 + $0x20] sm:$0xff] }
  0x77   :  { %v1109_v39 = vpack.c.bf16 %v566_v38, %v565_v37 }
  0x79   :  { %962 = vmatmul.mubr.msk.f32.vlgmr.msra.gmra.mrb[0].mxu0 %vm122_vm4, %v156_v42  ;;  %1110 = vmatprep.subr.bf16.mxu1 %v1109_v39  ;;  %v567_v42 = vld [vmem:[#allocation7 + $0x30] sm:$0xff] }
  0x7a   :  { %964 = vmatprep.mubr.f32.mxu0 %v155_v44  ;;  %1112 = vmatpush3.bf16.msra.mxu1 %v1109_v39  ;;  %v1113_v44 = vpack.c.bf16 %v568_v43, %v567_v42 }
  0x7c   :  { %1114 = vmatprep.subr.bf16.mxu1 %v1113_v44 }
  0x7d   :  { %965 = vmatmul.mubr.msk.f32.gmra.mrb[2].mxu0 %vm124_vm5, %v158_v45  ;;  %v569_v45 = vld [vmem:[#allocation7 + $0x40] sm:$0xff] }
  0x7e   :  { %1116 = vmatpush3.bf16.msra.mxu1 %v1113_v44 }
 0x12f   :  { %v887_v46 = vpop.f32.mrb[0].mxu1 }
 0x130   :  { %v270_v47 = vpop.f32.mrb[1].mxu1 }
 0x133   :  { %v890_v48 = vpop.f32.mrb[2].mxu1 }
 0x134   :  { %v280_v20 = vpop.f32.mrb[3].mxu1 }
 0x14c   :  { %v963_v50 = vpop.f32.mrb[0].mxu0 }
 0x14d   :  { %v1404_v51 = vadd.f32 %v963_v50, %v887_v46  ;;  %v457_v52 = vpop.f32.mrb[1].mxu0  ;;  %v570_v46 = vld [vmem:[#allocation7 + $0x48] sm:$0xff] }
 0x14e   :  { %v1406_v54 = vadd.f32 %v457_v52, %v270_v47  ;;  %v1117_v47 = vpack.c.bf16 %v570_v46, %v569_v45  ;;  %v573_v52 = vld [vmem:[#allocation7 + $0x60] sm:$0xff] }
 0x14f   :  { %v490_v55 = vmul.f32 %v1404_v51, %v1404_v51 }
 0x150   :  { %v489_v56 = vmul.f32 %v1406_v54, %v1406_v54  ;;  %v966_v57 = vpop.f32.mrb[2].mxu0  ;;  %v480_v60 = vadd.f32 %v1406_v54, %v1404_v51  ;;  %1118 = vmatprep.subr.bf16.mxu1 %v1117_v47 }
 0x151   :  { %v1412_v58 = vadd.f32 %v966_v57, %v890_v48  ;;  %v467_v59 = vpop.f32.mrb[3].mxu0  ;;  %1120 = vmatpush3.bf16.msra.mxu1 %v1117_v47  ;;  %v571_v48 = vld [vmem:[#allocation7 + $0x50] sm:$0xff] }
 0x152   :  { %v1416_v61 = vadd.f32 %v467_v59, %v280_v20  ;;  %v493_v62 = vadd.f32 %v490_v55, %v489_v56  ;;  %v572_v20 = vld [vmem:[#allocation7 + $0x58] sm:$0xff]  ;;  %v574_v55 = vld [vmem:[#allocation7 + $0x68] sm:$0xff]  ;;  %v575_v56 = vld [vmem:[#allocation7 + $0x70] sm:$0xff] }
 0x153   :  { %v492_v1 = vmul.f32 %v1412_v58, %v1412_v58  ;;  %v1121_v50 = vpack.c.bf16 %v572_v20, %v571_v48  ;;  %v1125_v57 = vpack.c.bf16 %v574_v55, %v573_v52  ;;  %v576_v59 = vld [vmem:[#allocation7 + $0x78] sm:$0xff] }
 0x154   :  { %v481_v63 = vadd.f32 %v1416_v61, %v480_v60  ;;  %v491_v0 = vmul.f32 %v1416_v61, %v1416_v61  ;;  %v1129_v60 = vpack.c.bf16 %v576_v59, %v575_v56 }
 0x155   :  { %1122 = vmatprep.subr.bf16.mxu1 %v1121_v50 }
 0x156   :  { %v482_v2 = vadd.f32 %v1412_v58, %v481_v63  ;;  %v494_v3 = vadd.f32 %v493_v62, %v491_v0  ;;  %1124 = vmatpush3.bf16.msra.mxu1 %v1121_v50 }
 0x157   :  { %1126 = vmatprep.subr.bf16.mxu1 %v1125_v57 }
 0x158   :  { %v483_v5 = vrot.slane %v482_v2, 4  ;;  %v495_v6 = vadd.f32 %v494_v3, %v492_v1 }
 0x15a   :  { %v484_v7 = vadd.f32 %v483_v5, %v482_v2  ;;  %v496_v8 = vrot.slane %v495_v6, 4  ;;  %1128 = vmatpush3.bf16.msra.mxu1 %v1125_v57 }
 0x15b   :  { %1130 = vmatprep.subr.bf16.mxu1 %v1129_v60 }
 0x15c   :  { %v485_v9 = vrot.slane %v484_v7, 2  ;;  %v497_v10 = vadd.f32 %v496_v8, %v495_v6 }
 0x15e   :  { %v486_v11 = vadd.f32 %v485_v9, %v484_v7  ;;  %v498_v12 = vrot.slane %v497_v10, 2  ;;  %1132 = vmatpush3.bf16.msra.mxu1 %v1129_v60  ;;  %v1435_v9 = vld [vmem:[%s1495_s3] sm:$0xf]  ;;  %s1256_s3 = smov [#allocation8]  }
 0x15f   :  { %s756_s5 = sshll.u32 %s1256_s3, 4  ;;  %s757_s5 = int_to_ptr.vmem [resolvable:$true] %s756_s5 }
 0x160   :  { %v487_v13 = vrot.slane %v486_v11, 1  ;;  %v499_v14 = vadd.f32 %v498_v12, %v497_v10  ;;  %v1438_v10 = vsub.s32 0, %v1334_v4  ;;  %s1220_s6 = scalar_lea.vmem %s757_s5, 512  ;;  %p1225_p11 = scmp.lt.s32.totalorder %s757_s5, %s757_s5 }
 0x161   :  { %p1221_p10 = scmp.ne.s32.totalorder %s757_s5, %s1220_s6  ;;  %p1226_p12 = scmp.lt.s32.totalorder %s1220_s6, %s1220_s6 }
 0x162   :  { %v488_v15 = vadd.f32 %v487_v13, %v486_v11  ;;  %v500_v16 = vrot.slane %v499_v14, 1  ;;  %v536_v13 = vrot.slane %v1435_v9, 1 }
 0x163   :  { %p1227_p13 = por %p1226_p12, %p1225_p11 }
 0x164   :  { %502 = vrot.lane.b32.xlu0 %v488_v15, %s1251_s28  ;;  %v501_v21 = vadd.f32 %v500_v16, %v499_v14 }
 0x165   :  { %p1228_p0 = pnand %p1227_p13, %p1221_p10 }
 0x168   :  { %515 = vrot.lane.b32.xlu0 %v501_v21, %s1251_s28 }
 0x1d6   :  { %v503_v22 = vpop.permute.xlu0 %502 }
 0x1d7   :  { %v504_v23 = vadd.f32 %v503_v22, %v488_v15 }
 0x1d9   :  { %505 = vrot.lane.b32.xlu1 %v504_v23, %s1253_s2 }
 0x1da   :  { %v516_v19 = vpop.permute.xlu0 %515 }
 0x1db   :  { %v517_v24 = vadd.f32 %v516_v19, %v501_v21 }
 0x1dd   :  { %518 = vrot.lane.b32.xlu1 %v517_v24, %s1253_s2 }
 0x24b   :  { %v506_v25 = vpop.permute.xlu1 %505 }
 0x24c   :  { %v507_v27 = vadd.f32 %v506_v25, %v504_v23 }
 0x24e   :  { %508 = vrot.lane.b32.xlu0 %v507_v27, %s1254_s25 }
 0x24f   :  { %v519_v26 = vpop.permute.xlu1 %518 }
 0x250   :  { %v520_v28 = vadd.f32 %v519_v26, %v517_v24 }
 0x252   :  { %521 = vrot.lane.b32.xlu1 %v520_v28, %s1254_s25 }
 0x2c0   :  { %v509_v35 = vpop.permute.xlu0 %508 }
 0x2c1   :  { %v510_v36 = vadd.f32 %v509_v35, %v507_v27 }
 0x2c3   :  { %511 = vrot.lane.b32.xlu0 %v510_v36, %s1255_s26 }
 0x2c4   :  { %v522_v40 = vpop.permute.xlu1 %521 }
 0x2c5   :  { %v523_v41 = vadd.f32 %v522_v40, %v520_v28 }
 0x2c7   :  { %524 = vrot.lane.b32.xlu1 %v523_v41, %s1255_s26 }
 0x335   :  { %v512_v62 = vpop.permute.xlu0 %511 }
 0x336   :  { %v513_v63 = vadd.f32 %v512_v62, %v510_v36 }
 0x338   :  { %v514_v0 = vmul.f32 0.001953125, %v513_v63 }
 0x339   :  { %v525_v1 = vpop.permute.xlu1 %524 }
 0x33a   :  { %v526_v2 = vadd.f32 %v525_v1, %v523_v41  ;;  %v528_v3 = vmul.f32 %v514_v0, %v514_v0 }
 0x33c   :  { %v527_v5 = vmul.f32 0.001953125, %v526_v2 }
 0x33e   :  { %v529_v6 = vsub.f32 %v527_v5, %v528_v3 }
 0x340   :  { %v530_v7 = vmax.f32 %v529_v6, 0.0 }
 0x342   :  { %v531_v8 = vadd.f32 1e-05, %v530_v7 }
 0x344   :  { %1150 = vrsqrt.f32 %v531_v8 }
 0x34e   :  { %v1151_v11 = vpop.eup %1150 }
 0x34f   :  { %v533_v12 = vmul.f32 %v1151_v11, %v1435_v9 }
 0x351   :  { %v534_v14 = vmul.f32 %v533_v12, %v514_v0  ;;  %v542_v15 = vrot.slane %v533_v12, %v1438_v10 }
 0x353   :  { %v538_v16 = vsub.f32 %v536_v13, %v534_v14  ;;  %v543_v21 = vmul.f32 %v1406_v54, %v542_v15  ;;  %v544_v23 = vmul.f32 %v1404_v51, %v542_v15  ;;  %v545_v19 = vmul.f32 %v1416_v61, %v542_v15 }
 0x354   :  { %v546_v26 = vmul.f32 %v1412_v58, %v542_v15 }
 0x355   :  { %v551_v22 = vrot.slane %v538_v16, %v1438_v10 }
 0x357   :  { %v553_v24 = vadd.f32 %v551_v22, %v543_v21  ;;  %v554_v25 = vadd.f32 %v551_v22, %v544_v23  ;;  %v555_v27 = vadd.f32 %v551_v22, %v545_v19  ;;  %v556_v30 = vadd.f32 %v551_v22, %v546_v26 }
 0x358   :  { %v722_v26 = vrot.slane %v1435_v9, 3 }
 0x359   :  { %v557_v28 = vmax.f32 %v553_v24, 0.0  ;;  %v558_v29 = vmax.f32 %v554_v25, 0.0  ;;  %v559_v31 = vmax.f32 %v555_v27, 0.0  ;;  %v560_v32 = vmax.f32 %v556_v30, 0.0 }
 0x35a   :  { %v717_v24 = vsub.s32 2, %v1334_v4 }
 0x35b   :  { %999 = vmatprep.mubr.f32.mxu1 %v557_v28 }
 0x35c   :  { %1000 = vmatmul.mubr.f32.vlgmr.msra.gmra.mrb[4].mxu1 %v558_v29  ;;  %v718_v25 = vrot.slane %v1435_v9, %v717_v24 }
 0x35d   :  { %1002 = vmatprep.mubr.f32.mxu1 %v559_v31 }
 0x360   :  { %1003 = vmatmul.mubr.f32.gmra.mrb[6].mxu1 %v560_v32 }
 0x42f   :  { %v1448_v54 = vpop.f32.mrb[4].mxu1 }
 0x430   :  { %v672_v51 = vmul.f32 %v1448_v54, %v1448_v54  ;;  %v1452_v61 = vpop.f32.mrb[5].mxu1 }
 0x431   :  { %v662_v33 = vadd.f32 %v1448_v54, %v1452_v61  ;;  %v671_v58 = vmul.f32 %v1452_v61, %v1452_v61 }
 0x433   :  { %v675_v34 = vadd.f32 %v672_v51, %v671_v58  ;;  %v1004_v35 = vpop.f32.mrb[6].mxu1 }
 0x434   :  { %v653_v36 = vpop.f32.mrb[7].mxu1  ;;  %v674_v39 = vmul.f32 %v1004_v35, %v1004_v35 }
 0x435   :  { %v663_v37 = vadd.f32 %v662_v33, %v653_v36  ;;  %v673_v38 = vmul.f32 %v653_v36, %v653_v36 }
 0x437   :  { %v664_v40 = vadd.f32 %v1004_v35, %v663_v37  ;;  %v676_v41 = vadd.f32 %v675_v34, %v673_v38 }
 0x439   :  { %v665_v42 = vrot.slane %v664_v40, 4  ;;  %v677_v43 = vadd.f32 %v676_v41, %v674_v39 }
 0x43b   :  { %v666_v44 = vadd.f32 %v665_v42, %v664_v40  ;;  %v678_v45 = vrot.slane %v677_v43, 4 }
 0x43d   :  { %v667_v46 = vrot.slane %v666_v44, 2  ;;  %v679_v47 = vadd.f32 %v678_v45, %v677_v43 }
 0x43f   :  { %v668_v48 = vadd.f32 %v667_v46, %v666_v44  ;;  %v680_v20 = vrot.slane %v679_v47, 2 }
 0x441   :  { %v669_v50 = vrot.slane %v668_v48, 1  ;;  %v681_v52 = vadd.f32 %v680_v20, %v679_v47 }
 0x443   :  { %v670_v55 = vadd.f32 %v669_v50, %v668_v48  ;;  %v682_v56 = vrot.slane %v681_v52, 1 }
 0x445   :  { %684 = vrot.lane.b32.xlu0 %v670_v55, %s1251_s28  ;;  %v683_v57 = vadd.f32 %v682_v56, %v681_v52 }
 0x447   :  { %697 = vrot.lane.b32.xlu1 %v683_v57, %s1251_s28 }
 0x4b7   :  { %v685_v59 = vpop.permute.xlu0 %684 }
 0x4b8   :  { %v686_v60 = vadd.f32 %v685_v59, %v670_v55 }
 0x4b9   :  { %v698_v62 = vpop.permute.xlu1 %697 }
 0x4ba   :  { %v699_v63 = vadd.f32 %v698_v62, %v683_v57  ;;  %687 = vrot.lane.b32.xlu0 %v686_v60, %s1253_s2 }
 0x4bc   :  { %700 = vrot.lane.b32.xlu1 %v699_v63, %s1253_s2 }
 0x52c   :  { %v688_v0 = vpop.permute.xlu0 %687 }
 0x52d   :  { %v689_v1 = vadd.f32 %v688_v0, %v686_v60 }
 0x52e   :  { %v701_v2 = vpop.permute.xlu1 %700 }
 0x52f   :  { %v702_v3 = vadd.f32 %v701_v2, %v699_v63  ;;  %690 = vrot.lane.b32.xlu0 %v689_v1, %s1254_s25 }
 0x531   :  { %703 = vrot.lane.b32.xlu1 %v702_v3, %s1254_s25 }
 0x5a1   :  { %v691_v5 = vpop.permute.xlu0 %690 }
 0x5a2   :  { %v692_v6 = vadd.f32 %v691_v5, %v689_v1 }
 0x5a3   :  { %v704_v7 = vpop.permute.xlu1 %703 }
 0x5a4   :  { %v705_v8 = vadd.f32 %v704_v7, %v702_v3  ;;  %693 = vrot.lane.b32.xlu0 %v692_v6, %s1255_s26 }
 0x5a6   :  { %706 = vrot.lane.b32.xlu1 %v705_v8, %s1255_s26 }
 0x616   :  { %v694_v11 = vpop.permute.xlu0 %693 }
 0x617   :  { %v695_v12 = vadd.f32 %v694_v11, %v692_v6 }
 0x618   :  { %v707_v13 = vpop.permute.xlu1 %706 }
 0x619   :  { %v696_v14 = vmul.f32 0.001953125, %v695_v12  ;;  %v708_v15 = vadd.f32 %v707_v13, %v705_v8 }
 0x61b   :  { %v710_v16 = vmul.f32 %v696_v14, %v696_v14  ;;  %v709_v21 = vmul.f32 0.001953125, %v708_v15 }
 0x61d   :  { %v711_v22 = vsub.f32 %v709_v21, %v710_v16 }
 0x61f   :  { %v712_v23 = vmax.f32 %v711_v22, 0.0 }
 0x621   :  { %v713_v19 = vadd.f32 1e-05, %v712_v23 }
 0x623   :  { %1152 = vrsqrt.f32 %v713_v19 }
 0x62d   :  { %v1153_v27 = vpop.eup %1152 }
 0x62e   :  { %v720_v28 = vmul.f32 %v1153_v27, %v718_v25 }
 0x630   :  { %v721_v29 = vmul.f32 %v720_v28, %v696_v14  ;;  %v728_v30 = vrot.slane %v720_v28, %v1438_v10 }
 0x632   :  { %v724_v31 = vsub.f32 %v722_v26, %v721_v29  ;;  %v729_v32 = vmul.f32 %v728_v30, %v1452_v61  ;;  %v730_v51 = vmul.f32 %v1448_v54, %v728_v30  ;;  %v731_v33 = vmul.f32 %v728_v30, %v653_v36 }
 0x633   :  { %v732_v58 = vmul.f32 %v1004_v35, %v728_v30 }
 0x634   :  { %v737_v34 = vrot.slane %v724_v31, %v1438_v10 }
 0x636   :  { %v739_v4 = vadd.f32 %v737_v34, %v729_v32  ;;  %v740_v37 = vadd.f32 %v737_v34, %v730_v51  ;;  %v741_v38 = vadd.f32 %v737_v34, %v731_v33  ;;  %v742_v39 = vadd.f32 %v737_v34, %v732_v58 }
 0x638   :  { %v743_v9 = vadd.f32 %v739_v4, %v1337_v17  ;;  %v744_v40 = vadd.f32 %v740_v37, %v1363_v49  ;;  %v745_v41 = vadd.f32 %v741_v38, %v1365_v53  ;;  %v746_v61 = vadd.f32 %v742_v39, %v1339_v18 }
 0x63a   :  { %747 = vst [vmem:[#allocation8] sm:$0xff] %v743_v9  ;;  %748 = vst [vmem:[#allocation8 + $0x8] sm:$0xff] %v744_v40 }
 0x63b   :  { %749 = vst [vmem:[#allocation8 + $0x10] sm:$0xff] %v745_v41  ;;  %750 = vst [vmem:[#allocation8 + $0x18] sm:$0xff] %v746_v61 }
 0x63c   :  { %1231 = shalt.err (!%p1228_p0)
}
 0x63d   :  { %s1232_s9 = scalar_lea.hbm %s1496_s4, 512 }
 0x63e   :  { %p1233_p1 = scmp.ne.s32.totalorder %s1496_s4, %s1232_s9  ;;  %p1236_p2 = scmp.lt.u32.totalorder %s1232_s9, %s1496_s4 }
 0x640   :  { %p1238_p3 = pnand %p1236_p2, %p1233_p1 }
 0x642   :  { %1241 = shalt.err (!%p1238_p3)
}
 0x643   :  { %762 = dma.vmem_to_hbm [thread:$0]  %s757_s5, 512, %s1496_s4, [#allocation4], %s1250_s27, %s1250_s27, %s1251_s28  }
 0x644   :  { %1246 = dma.done.wait [#allocation4], 512  }
 0x645   :  { %1247 = vsyncadd [#allocation4], 4294966784 }
 0x646   :  { %766 = vsyncpa [#allocation3], 1 }
 0x647   :  { %767 = vsyncpa [#allocation6], 1 }
 0x648   :  { %768 = vsyncpa [#allocation4], 1 }

</bundles_post_ra>
